<compile_context>
chip_gen: v7x
topology: tpu7x:2x2x1
jax: 0.10.0
libtpu: 0.0.40
codegen_flags: <defaults>
</compile_context>

<pallas_src>
from functools import partial

import jax
import jax.numpy as jnp
from jax import lax
from jax.experimental import pallas as pl
from jax.experimental.pallas import tpu as pltpu


def _round_up(x, m):
    return ((x + m - 1) // m) * m


# ---------------------------------------------------------------------------
# Kernel
# ---------------------------------------------------------------------------
def _indrnn_kernel(x_ref, w_ref, hx_ref, bh_ref, o_ref, *, dilation):
    # x_ref : (1, Hp, Kcp)  bf16  padded input rows for this batch, lane-dense
    #                             (lane axis = Wp*Cin, zero-padded to Kcp=128k)
    # w_ref : (K, Kcp, N)   bf16  banded conv weight; column (wo*Cout+co) of
    #                             slab kh carries W[kh,kw,:,co] at row wo+kw*d
    # hx_ref: (1, Ho, N)    f32   hidden state, lane-dense (N = Wo*Cout)
    # bh_ref: (2, N)        f32   row 0 = tiled conv bias, row 1 = tiled hh
    # o_ref : (1, Ho, N)          output, lane-dense
    K = w_ref.shape[0]
    Ho = o_ref.shape[1]

    xb = x_ref[0]                                     # (Hp, Kcp), VMEM-resident
    # K accumulating MXU dots over shifted row windows of the same VMEM block
    # (replaces the old K-fold im2col replication in HBM).
    acc = jnp.dot(xb[0:Ho, :], w_ref[0], preferred_element_type=jnp.float32)
    for kh in range(1, K):                            # K small & static: unrolled
        r0 = kh * dilation
        acc += jnp.dot(xb[r0:r0 + Ho, :], w_ref[kh],
                       preferred_element_type=jnp.float32)

    # f32 epilogue (v5e has no bf16 VPU/EUP); single cast at the final store.
    acc = acc + bh_ref[0:1, :]                        # + conv bias
    acc = acc + bh_ref[1:2, :] * hx_ref[0]            # + hh * hx
    o_ref[0] = jnp.maximum(acc, 0.0).astype(o_ref.dtype)


# ---------------------------------------------------------------------------
# Parameter-only constants: build ONCE per weight update, reuse every timestep
# ---------------------------------------------------------------------------
def make_indrnn_constants(w_oihw, bias, hh, *, kernel_size, dilation, width):
    """Banded weight matrix + merged (bias, hh) constant for the kernel.

    Depends only on the parameters and the spatial width (not on x / hx), so
    it must NOT be rebuilt per step.
    """
    K, d = kernel_size, dilation
    pad = (d * (K - 1)) // 2
    Cout, Cin = w_oihw.shape[0], w_oihw.shape[1]
    Wp = width + 2 * pad
    Wo = width + 2 * pad - d * (K - 1)
    Kc = Wp * Cin
    Kcp = _round_up(Kc, 128)                       # lane / MXU contraction granule
    N = Wo * Cout

    w_hwio = jnp.transpose(w_oihw, (2, 3, 1, 0)).astype(jnp.float32)   # (K,K,Cin,Cout)
    # Band selector: wband[kh,(wp,ci),(wo,co)] = W[kh,kw,ci,co] iff wp == wo + kw*d.
    sel = (jnp.arange(Wp)[None, :, None]
           == jnp.arange(Wo)[None, None, :] + d * jnp.arange(K)[:, None, None])
    wband = jnp.einsum('kpw,hkio->hpiwo', sel.astype(jnp.float32), w_hwio)
    wband = wband.reshape(K, Kc, N)
    wband = jnp.pad(wband, ((0, 0), (0, Kcp - Kc), (0, 0))).astype(jnp.bfloat16)

    bh = jnp.stack([jnp.tile(bias.reshape(Cout).astype(jnp.float32), Wo),
                    jnp.tile(hh.reshape(Cout).astype(jnp.float32), Wo)], axis=0)
    return wband, bh                                 # (K,Kcp,N) bf16, (2,N) f32


# ---------------------------------------------------------------------------
# Layout helpers (sequence-boundary only)
# ---------------------------------------------------------------------------
def prepare_input_lane(x_nchw, *, kernel_size, dilation, kcp):
    """NCHW input -> zero-padded lane-dense (B, Hp, Kcp) bf16 block."""
    K, d = kernel_size, dilation
    pad = (d * (K - 1)) // 2
    B, Cin, H, W = x_nchw.shape
    Hp, Wp = H + 2 * pad, W + 2 * pad
    x = jnp.transpose(x_nchw, (0, 2, 3, 1))                          # (B,H,W,Cin)
    x = jnp.pad(x, ((0, 0), (pad, pad), (pad, pad), (0, 0)))         # (B,Hp,Wp,Cin)
    x = x.reshape(B, Hp, Wp * Cin)
    x = jnp.pad(x, ((0, 0), (0, 0), (0, kcp - Wp * Cin)))            # lane-align
    return x.astype(jnp.bfloat16)


def nchw_to_lane(a_nchw):
    B, C, H, W = a_nchw.shape
    return jnp.transpose(a_nchw, (0, 2, 3, 1)).reshape(B, H, W * C)


def lane_to_nchw(a_lane, channels):
    B, H, WC = a_lane.shape
    return jnp.transpose(a_lane.reshape(B, H, WC // channels, channels), (0, 3, 1, 2))


# ---------------------------------------------------------------------------
# One recurrence step, all operands in the lane-dense layout
# ---------------------------------------------------------------------------
def indrnn_cell_step_lane(x_pad_lane, hx_lane, wband, bh, *, dilation, out_dtype=None):
    B, Hp, Kcp = x_pad_lane.shape
    K, Kcp_w, N = wband.shape
    Bh, Ho, N_h = hx_lane.shape
    assert Kcp == Kcp_w and N == N_h and Bh == B
    out_dtype = hx_lane.dtype if out_dtype is None else out_dtype

    flops = 2 * B * K * Ho * Kcp * N
    bytes_accessed = int(x_pad_lane.size * x_pad_lane.dtype.itemsize
                         + wband.size * wband.dtype.itemsize
                         + hx_lane.size * hx_lane.dtype.itemsize
                         + bh.size * bh.dtype.itemsize
                         + B * Ho * N * jnp.dtype(out_dtype).itemsize)

    return pl.pallas_call(
        partial(_indrnn_kernel, dilation=dilation),
        out_shape=jax.ShapeDtypeStruct((B, Ho, N), out_dtype),
        grid=(B,),
        in_specs=[
            pl.BlockSpec((1, Hp, Kcp), lambda b: (b, 0, 0)),   # padded input (per batch)
            pl.BlockSpec((K, Kcp, N), lambda b: (0, 0, 0)),    # banded weight (resident)
            pl.BlockSpec((1, Ho, N), lambda b: (b, 0, 0)),     # hidden state
            pl.BlockSpec((2, N), lambda b: (0, 0)),            # (bias, hh)
        ],
        out_specs=pl.BlockSpec((1, Ho, N), lambda b: (b, 0, 0)),
        compiler_params=pltpu.CompilerParams(
            dimension_semantics=("parallel",)),                # batch across TCs (v7x)
        cost_estimate=pl.CostEstimate(flops=int(flops), transcendentals=0,
                                      bytes_accessed=bytes_accessed),
    )(x_pad_lane, wband, hx_lane, bh)


# ---------------------------------------------------------------------------
# NCHW compatibility wrapper (matches the PyTorch module's forward signature)
# ---------------------------------------------------------------------------
def indrnn_cell_forward(x_nchw, hx_nchw, wband, bh, *, kernel_size, dilation):
    """ReLU(Conv2d(x) + hh * hx), NCHW in / NCHW out.

    For a real T-step recurrence keep hx in the lane-dense layout across steps
    (indrnn_cell_step_lane) and only convert at the sequence boundary.
    """
    K, d = kernel_size, dilation
    pad = (d * (K - 1)) // 2
    B, Cin, H, W = x_nchw.shape
    Ho = H + 2 * pad - d * (K - 1)
    Wo = W + 2 * pad - d * (K - 1)
    Cout = hx_nchw.shape[1]
    assert hx_nchw.shape == (B, Cout, Ho, Wo)

    kcp = wband.shape[1]
    x_lane = prepare_input_lane(x_nchw, kernel_size=K, dilation=d, kcp=kcp)
    hx_lane = nchw_to_lane(hx_nchw).astype(jnp.float32)   # recurrent state kept f32
    out_lane = indrnn_cell_step_lane(x_lane, hx_lane, wband, bh,
                                     dilation=d, out_dtype=x_nchw.dtype)
    return lane_to_nchw(out_lane, Cout)


# ---------------------------------------------------------------------------
# Pure-JAX reference (XLA conv) for correctness checks
# ---------------------------------------------------------------------------
def _reference_forward(x_nchw, hx_nchw, w_oihw, bias, hh, *, kernel_size, dilation,
                       matmul_dtype=jnp.float32):
    K, d = kernel_size, dilation
    pad = (d * (K - 1)) // 2
    y = lax.conv_general_dilated(
        x_nchw.astype(matmul_dtype), w_oihw.astype(matmul_dtype),
        window_strides=(1, 1),
        padding=((pad, pad), (pad, pad)),
        rhs_dilation=(d, d),
        dimension_numbers=("NCHW", "OIHW", "NCHW"),
        preferred_element_type=jnp.float32,
    )
    y = y + bias.reshape(1, -1, 1, 1)
    y = y + hh.reshape(1, -1, 1, 1) * hx_nchw.astype(jnp.float32)
    return jnp.maximum(y, 0.0).astype(x_nchw.dtype)


if __name__ == "__main__":
    # Module hyper-parameters (conv_dim=2 path of IndRNNCell).
    input_size = 4      # Cin
    hidden_size = 8     # Cout
    kernel_size = 3
    dilation = 1
    B, H, W = 2, 16, 16

    key = jax.random.PRNGKey(0)
    k_w, k_hh, k_x, k_hx = jax.random.split(key, 4)

    std = 1.0 / (hidden_size * (1 + kernel_size ** 2))
    # ih.weight ~ Normal(0, std); ih.bias = zeros; hh ~ Normal(0, std)
    w_ih = std * jax.random.normal(
        k_w, (hidden_size, input_size, kernel_size, kernel_size), jnp.float32)
    b_ih = jnp.zeros((hidden_size,), jnp.float32)
    hh = std * jax.random.normal(k_hh, (1, hidden_size, 1, 1), jnp.float32)

    x = jax.random.normal(k_x, (B, input_size, H, W), jnp.float32)
    hx = jax.random.normal(k_hx, (B, hidden_size, H, W), jnp.float32)

    # Parameter-only constants: built ONCE (per weight update), reused each step.
    wband, bh = make_indrnn_constants(w_ih, b_ih, hh, kernel_size=kernel_size,
                                      dilation=dilation, width=W)
    wband, bh = jax.block_until_ready((wband, bh))

    out = indrnn_cell_forward(x, hx, wband, bh,
                              kernel_size=kernel_size, dilation=dilation)
    out = jax.block_until_ready(out)
    assert out.shape == (B, hidden_size, H, W)

    # Tight check against a reference using the same bf16 MXU inputs / f32 accumulate.
    ref_bf16 = _reference_forward(x, hx, w_ih, b_ih, hh,
                                  kernel_size=kernel_size, dilation=dilation,
                                  matmul_dtype=jnp.bfloat16)
    assert jnp.allclose(out, ref_bf16, atol=1e-3, rtol=1e-3), "mismatch vs bf16-matched reference"

    # Loose check against full-f32 module semantics (only the MXU inputs are bf16).
    ref_f32 = _reference_forward(x, hx, w_ih, b_ih, hh,
                                 kernel_size=kernel_size, dilation=dilation)
    assert jnp.allclose(out, ref_f32, atol=1e-2, rtol=1e-2), "mismatch vs f32 reference"

    print("KERNEL_OK")
</pallas_src>

<mosaic_0001>
module attributes {stable_mosaic.version = 11 : i64} {
  func.func @_indrnn_kernel(%arg0: i32, %arg1: memref<1x18x128xbf16, #tpu.memory_space<vmem>>, %arg2: memref<3x128x128xbf16, #tpu.memory_space<vmem>>, %arg3: memref<1x16x128xf32, #tpu.memory_space<vmem>>, %arg4: memref<2x128xf32, #tpu.memory_space<vmem>>, %arg5: memref<1x16x128xf32, #tpu.memory_space<vmem>>) attributes {dimension_semantics = [#tpu.dimension_semantics<parallel>], iteration_bounds = array<i64: 2>, scalar_prefetch = 0 : i64, scratch_operands = 0 : i64, tpu.core_type = #tpu.core_type<tc>, window_params = [{transform_indices = @transform_0, window_bounds = array<i64: 1, 18, 128>}, {pipeline_mode = #tpu.pipeline_mode<synchronous>, transform_indices = @transform_1, window_bounds = array<i64: 3, 128, 128>}, {transform_indices = @transform_2, window_bounds = array<i64: 1, 16, 128>}, {pipeline_mode = #tpu.pipeline_mode<synchronous>, transform_indices = @transform_3, window_bounds = array<i64: 2, 128>}, {transform_indices = @transform_4, window_bounds = array<i64: 1, 16, 128>}]} {
    %c0 = arith.constant 0 : index
    %c0_0 = arith.constant 0 : index
    %c0_1 = arith.constant 0 : index
    %0 = vector.load %arg1[%c0, %c0_0, %c0_1] : memref<1x18x128xbf16, #tpu.memory_space<vmem>>, vector<1x18x128xbf16>
    %1 = vector.shape_cast %0 : vector<1x18x128xbf16> to vector<18x128xbf16>
    %2 = vector.extract_strided_slice %1 {offsets = [0, 0], sizes = [16, 128], strides = [1, 1]} : vector<18x128xbf16> to vector<16x128xbf16>
    %c0_2 = arith.constant 0 : index
    %c0_3 = arith.constant 0 : index
    %c0_4 = arith.constant 0 : index
    %3 = vector.load %arg2[%c0_2, %c0_3, %c0_4] : memref<3x128x128xbf16, #tpu.memory_space<vmem>>, vector<1x128x128xbf16>
    %4 = vector.shape_cast %3 : vector<1x128x128xbf16> to vector<128x128xbf16>
    %cst = arith.constant dense<0.000000e+00> : vector<16x128xf32>
    %5 = tpu.matmul %2, %4, %cst {dimension_numbers = #tpu.dot_dimension_numbers<[1], [0], [0], [1], [0, 0, 1, 1], [], []>} : vector<16x128xbf16>, vector<128x128xbf16>, vector<16x128xf32> -> vector<16x128xf32>
    %6 = vector.extract_strided_slice %1 {offsets = [1, 0], sizes = [16, 128], strides = [1, 1]} : vector<18x128xbf16> to vector<16x128xbf16>
    %c1 = arith.constant 1 : index
    %c0_5 = arith.constant 0 : index
    %c0_6 = arith.constant 0 : index
    %7 = vector.load %arg2[%c1, %c0_5, %c0_6] : memref<3x128x128xbf16, #tpu.memory_space<vmem>>, vector<1x128x128xbf16>
    %8 = vector.shape_cast %7 : vector<1x128x128xbf16> to vector<128x128xbf16>
    %cst_7 = arith.constant dense<0.000000e+00> : vector<16x128xf32>
    %9 = tpu.matmul %6, %8, %cst_7 {dimension_numbers = #tpu.dot_dimension_numbers<[1], [0], [0], [1], [0, 0, 1, 1], [], []>} : vector<16x128xbf16>, vector<128x128xbf16>, vector<16x128xf32> -> vector<16x128xf32>
    %10 = arith.addf %5, %9 : vector<16x128xf32>
    %11 = vector.extract_strided_slice %1 {offsets = [2, 0], sizes = [16, 128], strides = [1, 1]} : vector<18x128xbf16> to vector<16x128xbf16>
    %c2 = arith.constant 2 : index
    %c0_8 = arith.constant 0 : index
    %c0_9 = arith.constant 0 : index
    %12 = vector.load %arg2[%c2, %c0_8, %c0_9] : memref<3x128x128xbf16, #tpu.memory_space<vmem>>, vector<1x128x128xbf16>
    %13 = vector.shape_cast %12 : vector<1x128x128xbf16> to vector<128x128xbf16>
    %cst_10 = arith.constant dense<0.000000e+00> : vector<16x128xf32>
    %14 = tpu.matmul %11, %13, %cst_10 {dimension_numbers = #tpu.dot_dimension_numbers<[1], [0], [0], [1], [0, 0, 1, 1], [], []>} : vector<16x128xbf16>, vector<128x128xbf16>, vector<16x128xf32> -> vector<16x128xf32>
    %15 = arith.addf %10, %14 : vector<16x128xf32>
    %c0_11 = arith.constant 0 : index
    %c0_12 = arith.constant 0 : index
    %16 = vector.load %arg4[%c0_11, %c0_12] : memref<2x128xf32, #tpu.memory_space<vmem>>, vector<1x128xf32>
    %17 = vector.broadcast %16 : vector<1x128xf32> to vector<16x128xf32>
    %18 = arith.addf %15, %17 : vector<16x128xf32>
    %c1_13 = arith.constant 1 : index
    %c0_14 = arith.constant 0 : index
    %19 = vector.load %arg4[%c1_13, %c0_14] : memref<2x128xf32, #tpu.memory_space<vmem>>, vector<1x128xf32>
    %c0_15 = arith.constant 0 : index
    %c0_16 = arith.constant 0 : index
    %c0_17 = arith.constant 0 : index
    %20 = vector.load %arg3[%c0_15, %c0_16, %c0_17] : memref<1x16x128xf32, #tpu.memory_space<vmem>>, vector<1x16x128xf32>
    %21 = vector.shape_cast %20 : vector<1x16x128xf32> to vector<16x128xf32>
    %22 = vector.broadcast %19 : vector<1x128xf32> to vector<16x128xf32>
    %23 = arith.mulf %22, %21 : vector<16x128xf32>
    %24 = arith.addf %18, %23 : vector<16x128xf32>
    %cst_18 = arith.constant 0.000000e+00 : f32
    %25 = vector.broadcast %cst_18 : f32 to vector<16x128xf32>
    %26 = arith.maximumf %24, %25 : vector<16x128xf32>
    %c0_19 = arith.constant 0 : index
    %c0_20 = arith.constant 0 : index
    %c0_21 = arith.constant 0 : index
    %27 = vector.load %arg5[%c0_19, %c0_20, %c0_21] : memref<1x16x128xf32, #tpu.memory_space<vmem>>, vector<1x16x128xf32>
    %28 = vector.shape_cast %27 : vector<1x16x128xf32> to vector<16x128xf32>
    %29 = vector.shape_cast %26 : vector<16x128xf32> to vector<1x16x128xf32>
    tpu.vector_store %arg5[%c0_19, %c0_20, %c0_21], %29 {strides = array<i32>} : memref<1x16x128xf32, #tpu.memory_space<vmem>>, vector<1x16x128xf32>,
    return
  }
  func.func @transform_0(%arg0: i32) -> (i32, i32, i32) {
    %c0_i32 = arith.constant 0 : i32
    %c0_i32_0 = arith.constant 0 : i32
    %c0_i32_1 = arith.constant 0 : i32
    return %arg0, %c0_i32, %c0_i32_0 : i32, i32, i32
  }
  func.func @transform_1(%arg0: i32) -> (i32, i32, i32) {
    %c0_i32 = arith.constant 0 : i32
    %c0_i32_0 = arith.constant 0 : i32
    %c0_i32_1 = arith.constant 0 : i32
    %c0_i32_2 = arith.constant 0 : i32
    return %c0_i32, %c0_i32_0, %c0_i32_1 : i32, i32, i32
  }
  func.func @transform_2(%arg0: i32) -> (i32, i32, i32) {
    %c0_i32 = arith.constant 0 : i32
    %c0_i32_0 = arith.constant 0 : i32
    %c0_i32_1 = arith.constant 0 : i32
    return %arg0, %c0_i32, %c0_i32_0 : i32, i32, i32
  }
  func.func @transform_3(%arg0: i32) -> (i32, i32) {
    %c0_i32 = arith.constant 0 : i32
    %c0_i32_0 = arith.constant 0 : i32
    %c0_i32_1 = arith.constant 0 : i32
    return %c0_i32, %c0_i32_0 : i32, i32
  }
  func.func @transform_4(%arg0: i32) -> (i32, i32, i32) {
    %c0_i32 = arith.constant 0 : i32
    %c0_i32_0 = arith.constant 0 : i32
    %c0_i32_1 = arith.constant 0 : i32
    return %arg0, %c0_i32, %c0_i32_0 : i32, i32, i32
  }
}

</mosaic_0001>

<bundles_post_ra>
// kernel: tpu_custom_call.1
= control target key start
LH: loop header
LB: loop body
LE: loop exit
PB: predicated region body
PF: predicated region fallthrough
CT: control target
= control target key end

     0   :  { %9 = vsyncpa [#allocation3], 0  ;;  %s1229_s0 = inlined_call_operand.vmem [shape: bf16[2,18,128], index: 0, kind: input, shape index: {}]   ;;  %s1230_s1 = inlined_call_operand.hbm [shape: bf16[3,128,128], index: 1, kind: input, shape index: {}]   ;;  %s1231_s2 = inlined_call_operand.vmem [shape: f32[2,16,128], index: 2, kind: input, shape index: {}]   ;;  %s1232_s3 = inlined_call_operand.vmem [shape: f32[2,128], index: 3, kind: input, shape index: {}]   ;;  %s1233_s4 = inlined_call_operand.hbm [shape: f32[2,16,128], index: 4, kind: output, shape index: {}]  }
   0x1   :  { %10 = vsyncpa [#allocation4], 0 }
   0x2   :  { %12 = vsyncpa [#allocation4 + $0x1], 0  ;;  %s1048_s15 = smov 0   ;;  %s1050_s16 = smov 0  }
   0x3   :  { %s1052_s17 = smov 0   ;;  %s1054_s18 = smov 0  }
   0x4 LB: > { %s1069_s19 = sadd.s32 4294967295, %s1013_s18   ;;  %s704_s20 = sadd.s32 4294967294, %s1013_s18   ;;  %s1013_s18 = sphi %s1054_s18, %s1249_s18   ;;  %s1009_s17 = sphi %s1052_s17, %s1248_s17   ;;  %s1005_s16 = sphi %s1050_s16, %s1247_s16   ;;  %s1001_s15 = sphi %s1048_s15, %s1246_s15  }
   0x5   : > { %s1073_s21 = sadd.s32 1, %s1013_s18   ;;  %s119_s22 = sadd.s32 1, %s1009_s17 }
   0x6   : > { %s116_s23 = ssub.s32 %s1013_s18, %s1073_s21  ;;  %p129_p0 = scmp.ne.s32.totalorder %s1009_s17, %s1005_s16 }
   0x7   : > { %p117_p1 = scmp.eq.s32.totalorder %s116_s23, 0  ;;  %p130_p2 = scmp.eq.s32.totalorder %s1069_s19, 1 }
   0x8   : > { %p135_p3 = scmp.ne.s32.totalorder %s1005_s16, %s1001_s15  ;;  %p136_p4 = scmp.eq.s32.totalorder %s704_s20, 1 }
   0x9   : > { %s1084_s24 = scalar_select %p117_p1, %s1009_s17, %s119_s22  }
   0xa   : > { %p1086_p5 = por %p130_p2, %p129_p0  ;;  %p1090_p6 = por %p136_p4, %p135_p3 }
   0xb   : > { %p705_p7 = scmp.ge.s32.totalorder %s1013_s18, 1  ;;  %p143_p8 = scmp.lt.s32.totalorder %s1013_s18, 3 }
   0xc   : > { %s1237_s25 = scalar_select %p1086_p5, 1, 0 }
   0xd   : > { %s1238_s26 = scalar_select %p1090_p6, 1, 0 }
   0xe   : > { %p1234_p9 = scmp.eq.s32.totalorder %s1069_s19, 0  ;;  %p1097_p10 = pnand %p705_p7, %p143_p8 }
   0xf   : > { %s1015_s28 = smov [#allocation2]   ;;  %s919_s7 = scalar_lea.hbm %s1230_s1, 3072 }
  0x10   : > { %s1239_s27 = scalar_select %p1097_p10, 1, 0 }
  0x11   : > { %s155_s29 = sshll.u32 %s1015_s28, 4  ;;  %p843_p11 = pneg %p1097_p10  ;;  %s156_s29 = int_to_ptr.vmem [resolvable:$true] %s155_s29 }
  0x12   : > { %p920_p13 = scmp.ne.s32.totalorder %s1230_s1, %s919_s7  ;;  %p926_p3 = scmp.lt.u32.totalorder %s919_s7, %s1230_s1 }
  0x13   : > { %p1105_p12 = pnand %p1234_p9, %p843_p11 }
  0x15   : > { %p921_p0 = pneg %p1105_p12 }
  0x17   : > { %p922_p1 = pnand %p921_p0, %p920_p13 }
  0x19   : > { %p923_p2 = pneg %p922_p1 }
  0x1b   : > { %p928_p4 = pnand %p926_p3, %p923_p2 }
  0x1d   : > { %931 = shalt.err (!%p928_p4)
}
  0x1e   : > { %s932_s12 = scalar_lea.vmem %s156_s29, 3072  ;;  %p940_p9 = scmp.lt.s32.totalorder %s156_s29, %s156_s29 }
  0x1f   : > { %p933_p7 = scmp.ne.s32.totalorder %s156_s29, %s932_s12  ;;  %p941_p6 = scmp.lt.s32.totalorder %s932_s12, %s932_s12 }
  0x21   : > { %p935_p8 = pnand %p933_p7, %p921_p0  ;;  %p942_p5 = por %p941_p6, %p940_p9 }
  0x23   : > { %p936_p11 = pneg %p935_p8 }
  0x25   : > { %p943_p10 = pnand %p942_p5, %p936_p11 }
  0x27   : > { %946 = shalt.err (!%p943_p10)
}
  0x28   : > { %s1016_s13 = smov 64   ;;  %s1017_s14 = smov 4  }
  0x29   : > { %846 = dma.hbm_to_vmem [thread:$0]  (!%p1105_p12), %s1230_s1, 3072, %s156_s29, [#allocation3], %s1016_s13, %s1016_s13, %s1017_s14  }
  0x2a   : > { %p1241_p13 = scmp.ne.s32.totalorder %s1239_s27, 0 }
  0x2b   : > { %p1242_p1 = scmp.eq.s32.totalorder (!%p1241_p13), %s1069_s19, 0 }
  0x2c   : > { %190 = sbr.rel (%p1241_p13) target bundleno = 355 (0x163), region = 36 }
  0x33   : > { %992 = dma.done.wait (%p1242_p1), [#allocation3], 3072   ;;  %p1243_p0 = pmov %p1242_p1 }
  0x34   : > { %v1018_v0 = vmov 0.0   ;;  %vm1019_vm0 = vmmov 0   ;;  %v893_v1 = vld [vmem:[#allocation2 + $0x40] sm:$0xff]   ;;  %v895_v3 = vld [vmem:[#allocation2 + $0x48] sm:$0xff]   ;;  %p221_p5 = scmp.lt.s32.totalorder %s1069_s19, 1  ;;  %v897_v5 = vld [vmem:[#allocation2 + $0x50] sm:$0xff]  }
  0x35   : > { %994 = vsyncadd (%p1243_p0), [#allocation3], 4294964224  ;;  %776 = vmatprep.subr.bf16.mxu0 %v1018_v0  ;;  %796 = vmatprep.subr.bf16.mxu1 %v1018_v0  ;;  %v894_v2 = vld [vmem:[#allocation2] sm:$0xff]   ;;  %v896_v4 = vld [vmem:[#allocation2 + $0x8] sm:$0xff]   ;;  %vm276_vm1 = vsmask.f32 7424 }
  0x36   : > { %792 = vmatprep.mubr.msk.bf16.mxu0 %vm1019_vm0, %v1018_v0  ;;  %812 = vmatprep.mubr.msk.bf16.mxu1 %vm1019_vm0, %v1018_v0  ;;  %s1141_s23 = scalar_select %p221_p5, %s1069_s19, 1  ;;  %v898_v6 = vld [vmem:[#allocation2 + $0x10] sm:$0xff]   ;;  %v899_v7 = vld [vmem:[#allocation2 + $0x58] sm:$0xff]   ;;  %v901_v9 = vld [vmem:[#allocation2 + $0x60] sm:$0xff]   ;;  %vm486_vm2 = vcmask 1046528  }
  0x37   : > { %777 = vmatpush3.bf16.msra.mxu0 %v893_v1  ;;  %797 = vmatpush3.bf16.msra.mxu1 %v894_v2  ;;  %v900_v8 = vld [vmem:[#allocation2 + $0x18] sm:$0xff]   ;;  %v902_v10 = vld [vmem:[#allocation2 + $0x20] sm:$0xff]   ;;  %v903_v13 = vld [vmem:[#allocation2 + $0x68] sm:$0xff]   ;;  %s218_s9 = sand.u32 1, %s1005_s16   ;;  %p1244_p9 = scmp.ne.s32.totalorder %s1237_s25, 0 }
  0x38   : > { %778 = vmatprep.subr.bf16.mxu0 %v1018_v0  ;;  %798 = vmatprep.subr.bf16.mxu1 %v1018_v0  ;;  %s836_s27 = smul.u32 12, %s1141_s23  ;;  %v904_v14 = vld [vmem:[#allocation2 + $0x28] sm:$0xff]   ;;  %v905_v16 = vld [vmem:[#allocation2 + $0x70] sm:$0xff]   ;;  %v907_v21 = vld [vmem:[#allocation2 + $0x78] sm:$0xff]   ;;  %s747_s5 = sshll.u32 %s1141_s23, 4 }
  0x39   : > { %v906_v20 = vld [vmem:[#allocation2 + $0x30] sm:$0xff]   ;;  %v908_v24 = vld [vmem:[#allocation2 + $0x38] sm:$0xff]   ;;  %v911_v26 = vld [vmem:[#allocation2 + $0x80] sm:$0xff]   ;;  %s230_s8 = scalar_lea.vmem %s1231_s2, %s747_s5  ;;  %s710_s12 = sshll.u32 %s218_s9, 4 }
  0x3a   : > { %s225_s30 = scalar_lea.vmem %s1229_s0, %s836_s27  ;;  %v912_v27 = vld [vmem:[#allocation2 + $0x88] sm:$0xff]   ;;  %v913_v28 = vld [vmem:[#allocation2 + $0x90] sm:$0xff]   ;;  %v914_v29 = vld [vmem:[#allocation2 + $0x98] sm:$0xff]   ;;  %s220_s20 = scalar_lea.vmem [#allocation5], %s710_s12 }
  0x3b   : > { %779 = vmatpush3.bf16.msra.mxu0 %v895_v3  ;;  %799 = vmatpush3.bf16.msra.mxu1 %v896_v4  ;;  %v909_v11 = vld [vmem:[%s225_s30] sm:$0xff]   ;;  %v910_v12 = vld [vmem:[%s225_s30 + $0x8] ss:$0 sps:$4 sm:$0x11]   ;;  %v915_v30 = vld [vmem:[#allocation2 + $0xa0] sm:$0xff]   ;;  %s618_s22 = sshll.u32 %s220_s20, 4  ;;  %s1181_s22 = int_to_ptr.vmem [resolvable:$true] %s618_s22 }
  0x3c   : > { %780 = vmatprep.subr.bf16.mxu0 %v1018_v0  ;;  %800 = vmatprep.subr.bf16.mxu1 %v1018_v0  ;;  %v280_v15 = vshll.u32 %v909_v11, 16  ;;  %v278_v17 = vshrl.u32 %v909_v11, 16  ;;  %v285_v19 = vshll.u32 %v910_v12, 16  ;;  %v916_v31 = vld [vmem:[#allocation2 + $0xa8] sm:$0xff]   ;;  %v917_v32 = vld [vmem:[#allocation2 + $0xb0] sm:$0xff]   ;;  %v918_v33 = vld [vmem:[#allocation2 + $0xb8] sm:$0xff]  }
  0x3d   : > { %v487_v34 = vrot.slane %v909_v11, 1  ;;  %v488_v35 = vrot.slane %v910_v12, 1  ;;  %v741_v47 = vld [vmem:[%s1232_s3 + $0x1] ss:$0 sm:$0xff]  ;;  %v740_v50 = vld [vmem:[%s1232_s3] ss:$0 sm:$0xff] }
  0x3e   : > { %v282_v18 = vrot.slane %v280_v15, 1  ;;  %v287_v23 = vrot.slane %v285_v19, 1  ;;  %v590_v48 = vld [vmem:[%s230_s8] sm:$0xff]  ;;  %v591_v51 = vld [vmem:[%s230_s8 + $0x8] sm:$0xff]  ;;  %s748_s23 = sshll.u32 %s1069_s19, 8  ;;  %s1188_s30 = scalar_lea.sflag [#allocation4], %s218_s9 }
  0x3f   : > { %781 = vmatpush3.bf16.msra.mxu0 %v897_v5  ;;  %801 = vmatpush3.bf16.msra.mxu1 %v898_v6  ;;  %v489_v36 = vsel %vm486_vm2, %v487_v34, %v488_v35  ;;  %v596_v53 = vmul.f32 %v741_v47, %v590_v48  ;;  %v597_v58 = vmul.f32 %v741_v47, %v591_v51  ;;  %s1186_s29 = scalar_lea.hbm %s1233_s4, %s748_s23  ;;  %s947_s5 = scalar_lea.vmem %s1181_s22, 256 }
  0x40   : > { %782 = vmatprep.subr.bf16.mxu0 %v1018_v0  ;;  %802 = vmatprep.subr.bf16.mxu1 %v1018_v0  ;;  %v283_v22 = vor.u32 %v282_v18, %v278_v17  ;;  %p948_p6 = scmp.ne.s32.totalorder %s1181_s22, %s947_s5  ;;  %s1020_s19 = smov [#allocation5]  }
  0x41   : > { %s951_s6 = sshll.u32 %s1020_s19, 4  ;;  %s952_s6 = int_to_ptr.vmem [resolvable:$false] %s951_s6 }
  0x42   : > { %v288_v25 = vsel %vm276_vm1, %v283_v22, %v287_v23  ;;  %p949_p10 = pnand %p948_p6, %p1244_p9  ;;  %s953_s7 = scalar_lea.vmem %s952_s6, 512 }
  0x43   : > { %783 = vmatpush3.bf16.msra.mxu0 %v899_v7  ;;  %803 = vmatpush3.bf16.msra.mxu1 %v900_v8  ;;  %p954_p2 = scmp.lt.s32.totalorder %s1181_s22, %s952_s6  ;;  %p955_p3 = scmp.lt.s32.totalorder %s953_s7, %s947_s5 }
  0x44   : > { %784 = vmatprep.subr.bf16.mxu0 %v1018_v0  ;;  %804 = vmatprep.subr.bf16.mxu1 %v1018_v0  ;;  %p950_p12 = pneg %p949_p10 }
  0x45   : > { %p956_p4 = por %p955_p3, %p954_p2 }
  0x47   : > { %785 = vmatpush3.bf16.msra.mxu0 %v901_v9  ;;  %805 = vmatpush3.bf16.msra.mxu1 %v902_v10  ;;  %p957_p7 = pnand %p956_p4, %p950_p12 }
  0x48   : > { %786 = vmatprep.subr.bf16.mxu0 %v1018_v0  ;;  %806 = vmatprep.subr.bf16.mxu1 %v1018_v0 }
  0x4b   : > { %787 = vmatpush3.bf16.msra.mxu0 %v903_v13  ;;  %807 = vmatpush3.bf16.msra.mxu1 %v904_v14 }
  0x4c   : > { %788 = vmatprep.subr.bf16.mxu0 %v1018_v0  ;;  %808 = vmatprep.subr.bf16.mxu1 %v1018_v0 }
  0x4f   : > { %789 = vmatpush3.bf16.msra.mxu0 %v905_v16  ;;  %809 = vmatpush3.bf16.msra.mxu1 %v906_v20 }
  0x50   : > { %790 = vmatprep.subr.bf16.mxu0 %v1018_v0  ;;  %810 = vmatprep.subr.bf16.mxu1 %v1018_v0 }
  0x53   : > { %791 = vmatpush3.bf16.msra.mxu0 %v907_v21  ;;  %811 = vmatpush3.bf16.msra.mxu1 %v908_v24 }
  0x54   : > { %816 = vmatprep.subr.bf16.mxu0 %v1018_v0 }
  0x56   : > { %793 = vmatmul.mubr.bf16.vlgmr.msra.gmra.mrb[0].mxu0 %v288_v25  ;;  %813 = vmatmul.mubr.bf16.vlgmr.msra.gmra.mrb[0].mxu1 %v909_v11 }
  0x57   : > { %817 = vmatpush3.bf16.msra.mxu0 %v911_v26  ;;  %832 = vmatprep.mubr.msk.bf16.mxu0 %vm1019_vm0, %v1018_v0 }
  0x58   : > { %818 = vmatprep.subr.bf16.mxu0 %v1018_v0 }
  0x5b   : > { %819 = vmatpush3.bf16.msra.mxu0 %v912_v27 }
  0x5c   : > { %820 = vmatprep.subr.bf16.mxu0 %v1018_v0 }
  0x5f   : > { %821 = vmatpush3.bf16.msra.mxu0 %v913_v28 }
  0x60   : > { %822 = vmatprep.subr.bf16.mxu0 %v1018_v0 }
  0x63   : > { %823 = vmatpush3.bf16.msra.mxu0 %v914_v29 }
  0x64   : > { %824 = vmatprep.subr.bf16.mxu0 %v1018_v0 }
  0x67   : > { %825 = vmatpush3.bf16.msra.mxu0 %v915_v30 }
  0x68   : > { %826 = vmatprep.subr.bf16.mxu0 %v1018_v0 }
  0x6b   : > { %827 = vmatpush3.bf16.msra.mxu0 %v916_v31 }
  0x6c   : > { %828 = vmatprep.subr.bf16.mxu0 %v1018_v0 }
  0x6f   : > { %829 = vmatpush3.bf16.msra.mxu0 %v917_v32 }
  0x70   : > { %830 = vmatprep.subr.bf16.mxu0 %v1018_v0 }
  0x73   : > { %831 = vmatpush3.bf16.msra.mxu0 %v918_v33 }
  0x76   : > { %833 = vmatmul.mubr.bf16.vlgmr.msra.gmra.mrb[4].mxu0 %v489_v36 }
 0x129   : > { %v372_v37 = vpop.f32.mrb[0].mxu0  ;;  %v462_v38 = vpop.f32.mrb[0].mxu1 }
 0x12a   : > { %v794_v39 = vpop.f32.mrb[1].mxu0  ;;  %v463_v40 = vadd.f32 %v462_v38, %v372_v37  ;;  %v814_v41 = vpop.f32.mrb[1].mxu1 }
 0x12b   : > { %v375_v42 = vpop.f32.mrb[2].mxu0  ;;  %v465_v43 = vpop.f32.mrb[2].mxu1 }
 0x12c   : > { %v795_v44 = vpop.f32.mrb[3].mxu0  ;;  %v466_v45 = vadd.f32 %v465_v43, %v375_v42  ;;  %v815_v46 = vpop.f32.mrb[3].mxu1 }
 0x149   : > { %v573_v49 = vpop.f32.mrb[4].mxu0 }
 0x14a   : > { %v580_v52 = vadd.f32 %v573_v49, %v463_v40  ;;  %v834_v54 = vpop.f32.mrb[5].mxu0 }
 0x14b   : > { %v576_v55 = vpop.f32.mrb[6].mxu0 }
 0x14c   : > { %v587_v56 = vadd.f32 %v740_v50, %v580_v52  ;;  %v581_v57 = vadd.f32 %v576_v55, %v466_v45  ;;  %v835_v59 = vpop.f32.mrb[7].mxu0 }
 0x14e   : > { %v598_v60 = vadd.f32 %v596_v53, %v587_v56  ;;  %v588_v61 = vadd.f32 %v740_v50, %v581_v57 }
 0x150   : > { %v600_v62 = vmax.f32 %v598_v60, 0.0  ;;  %v599_v63 = vadd.f32 %v597_v58, %v588_v61 }
 0x152   : > { %602 = vst [vmem:[%s220_s20] sm:$0xff] %v600_v62  ;;  %v601_v0 = vmax.f32 %v599_v63, 0.0 }
 0x154   : > { %603 = vst [vmem:[%s220_s20 + $0x8] sm:$0xff] %v601_v0 }
 0x155   : > { %960 = shalt.err (!%p957_p7)
}
 0x156   : > { %s961_s8 = scalar_lea.hbm %s1186_s29, 256  ;;  %s965_s11 = scalar_lea.hbm %s1233_s4, 512 }
 0x157   : > { %p962_p8 = scmp.ne.s32.totalorder %s1186_s29, %s961_s8  ;;  %p966_p1 = scmp.lt.u32.totalorder %s1186_s29, %s1233_s4 }
 0x158   : > { %p967_p0 = scmp.lt.u32.totalorder %s965_s11, %s961_s8  ;;  %p969_p6 = scmp.lt.u32.totalorder %s961_s8, %s1186_s29 }
 0x159   : > { %p963_p11 = pnand %p962_p8, %p1244_p9 }
 0x15a   : > { %p968_p5 = por %p967_p0, %p966_p1 }
 0x15b   : > { %p964_p13 = pneg %p963_p11 }
 0x15c   : > { %p970_p10 = por %p969_p6, %p968_p5 }
 0x15e   : > { %p971_p12 = pnand %p970_p10, %p964_p13 }
 0x160   : > { %974 = shalt.err (!%p971_p12)
}
 0x161   : > { %s1021_s14 = smov 128   ;;  %s1022_s20 = smov 8  }
 0x162   : > { %841 = dma.vmem_to_hbm [thread:$0]  (%p1244_p9), %s1181_s22, 256, %s1186_s29, %s1188_s30, %s1021_s14, %s1021_s14, %s1022_s20  }
 0x163 PF: > { %p853_p2 = scmp.ge.s32.totalorder %s1013_s18, 2  ;;  %s633_s23 = sand.u32 1, %s1001_s15  }
 0x164   : > { %p1245_p3 = scmp.ne.s32.totalorder %s1238_s26, 0  ;;  %s634_s27 = scalar_lea.sflag [#allocation4], %s633_s23 }
 0x166   : > { %p848_p4 = pnand %p853_p2, %p1245_p3 }
 0x168   : > { %996 = dma.done.wait (!%p848_p4), %s634_s27, 256  }
 0x169   : > { %998 = vsyncadd (!%p848_p4), %s634_s27, 4294967040  ;;  %p15_p7 = scmp.ge.s32.totalorder %s1073_s21, 4   ;;  %s1246_s15 = smov %s1005_s16 }
 0x16a   : > { %s1247_s16 = smov %s1009_s17  ;;  %s1248_s17 = smov %s1084_s24 }
 0x16b   : > { %s1249_s18 = smov %s1073_s21  ;;  %17 = sbr.rel (!%p15_p7) target bundleno = 4 (0x4), region = 81 }
 0x172   :  { %639 = vsyncpa [#allocation3], 1 }
 0x173   :  { %641 = vsyncpa [#allocation3 + $0x1], 1 }
 0x174   :  { %642 = vsyncpa [#allocation4], 1 }
 0x175   :  { %644 = vsyncpa [#allocation4 + $0x1], 1 }

</bundles_post_ra>
